<compile_context>
chip_gen: v5e
topology: v5e:2x2
jax: 0.10.0
libtpu: 0.0.40
codegen_flags: <defaults>
</compile_context>

<pallas_src>
import functools

import jax
import jax.numpy as jnp
from jax.experimental import pallas as pl
from jax.experimental.pallas import tpu as pltpu


def _round_up(x, m):
    return ((x + m - 1) // m) * m


# ---------------------------------------------------------------------------
# Generation-aware VMEM budgeting (v5e/v6e: 128 MiB, v7x: 64 MiB per core).
# ---------------------------------------------------------------------------
@functools.lru_cache(maxsize=None)
def _vmem_params():
    try:
        cap = int(pltpu.get_tpu_info().vmem_capacity_bytes)
    except Exception:  # emulator / API unavailable -> size for the smallest (v7x)
        cap = 64 * 1024 * 1024
    budget = max(16 << 20, min(int(cap * 0.55), 80 << 20))   # tile working set
    limit = max(24 << 20, min(int(cap * 0.75), 100 << 20))   # scoped-VMEM cap
    # v7x heuristic: ~64 MiB VMEM per core and 2 TensorCores per chip.
    two_core = cap < 100 * 1024 * 1024
    return budget, limit, two_core


# ---------------------------------------------------------------------------
# 1. Fused tiled linear kernel:  y = relu?(x @ W + b)
# ---------------------------------------------------------------------------
def _linear_kernel(x_ref, w_ref, b_ref, o_ref, *acc_ref, use_relu):
    # x_ref: (tm, tk)  w_ref: (tk, tn)  b_ref: (1, tn) f32  o_ref: (tm, tn)
    if not acc_ref:
        # Single K block: write straight through, no accumulator round trip.
        y = jnp.dot(x_ref[...], w_ref[...],
                    preferred_element_type=jnp.float32) + b_ref[...]
        if use_relu:
            y = jnp.maximum(y, 0.0)
        o_ref[...] = y.astype(o_ref.dtype)
        return

    acc = acc_ref[0]  # (tm, tn) f32 scratch carried across the K grid axis

    @pl.when(pl.program_id(2) == 0)
    def _init():
        acc[...] = jnp.zeros_like(acc)

    acc[...] += jnp.dot(x_ref[...], w_ref[...],
                        preferred_element_type=jnp.float32)

    @pl.when(pl.program_id(2) == pl.num_programs(2) - 1)
    def _finalize():
        y = acc[...] + b_ref[...]          # bias stays f32 (no double rounding)
        if use_relu:
            y = jnp.maximum(y, 0.0)
        o_ref[...] = y.astype(o_ref.dtype)


def _choose_tiles(M, K, N, itemsize, budget, two_core):
    """Pick (tm, tk, tn).

    - tn: whole output width when N <= 1024 (keeps nn == 1 so the x row tile is
      streamed from HBM once); otherwise 512-wide lane-aligned tiles.
    - tm: up to 512 rows, aligned to the packed-sublane height (16 bf16 / 8 f32).
    - tk: full K unless that blows the VMEM budget; then the largest 128-aligned
      exact divisor of K (a ragged K edge must never reach the accumulator).
    """
    row_align = 16 if itemsize == 2 else 8
    lane = 128
    tn = N if N <= 1024 else 512
    tm = min(512, _round_up(M, row_align))
    tk = K

    def est(tm_, tk_, tn_):
        # double-buffered x/w tiles + f32 bias + f32 acc + double-buffered out
        return (2 * (tm_ * tk_ + tk_ * tn_) * itemsize
                + 2 * tn_ * 4 + 3 * tm_ * tn_ * 4)

    if est(tm, tk, tn) > budget:
        divisors = [c for c in (4096, 2048, 1024, 512, 256, 128) if K % c == 0]
        fitting = [c for c in divisors if est(tm, c, tn) <= budget]
        if fitting:
            tk = fitting[0]
        elif divisors:
            tk = divisors[-1]
        # TODO(synk): K with no 128-aligned exact divisor keeps tk == K; only
        # tm/tn shrink below (correct, but may stay VMEM-heavy).
    while est(tm, tk, tn) > budget and tm > 128:
        tm = max(128, _round_up(tm // 2, row_align))
    while est(tm, tk, tn) > budget and tn > lane:
        tn = max(lane, _round_up(tn // 2, lane))

    # v7x: 2 TensorCores shard the "parallel" grid axes; when the N axis has a
    # single block, keep at least 2 row blocks so both cores get work.
    if two_core and pl.cdiv(N, tn) == 1 and M > row_align:
        tm = min(tm, max(row_align, _round_up(pl.cdiv(M, 2), row_align)))
    return tm, tk, tn


def pallas_linear(x, w, b=None, *, use_relu=False, compute_dtype=None,
                  out_dtype=None):
    """y = relu?(x @ w + b); x (..., K), w (K, N), b (N,) or None.

    compute_dtype: cast x/w to this dtype for the MXU (bf16 recommended on
      v6e/v7x); accumulation is always f32.
    out_dtype: dtype of the emitted activation (defaults to x.dtype).  Pass the
      compute dtype to keep chained intermediates narrow in HBM.
    """
    orig_shape = x.shape
    K = orig_shape[-1]
    Kw, N = w.shape
    assert Kw == K, (Kw, K)
    if out_dtype is None:
        out_dtype = x.dtype

    x2 = x.reshape(-1, K)
    M = x2.shape[0]
    if compute_dtype is not None:
        x2 = x2.astype(compute_dtype)
        w = w.astype(compute_dtype)
    itemsize = x2.dtype.itemsize

    budget, limit, two_core = _vmem_params()
    tm, tk, tn = _choose_tiles(M, K, N, itemsize, budget, two_core)
    nm, nn, nk = pl.cdiv(M, tm), pl.cdiv(N, tn), pl.cdiv(K, tk)

    b2 = (jnp.zeros((1, N), jnp.float32) if b is None
          else b.astype(jnp.float32).reshape(1, N))

    if nk > 4:
        # deeper prefetch for the streamed weight tiles on large-K configs
        w_spec = pl.BlockSpec((tk, tn), lambda i, j, k: (k, j),
                              pipeline_mode=pl.Buffered(3))
    else:
        w_spec = pl.BlockSpec((tk, tn), lambda i, j, k: (k, j))

    out = pl.pallas_call(
        functools.partial(_linear_kernel, use_relu=use_relu),
        out_shape=jax.ShapeDtypeStruct((M, N), out_dtype),
        grid_spec=pltpu.PrefetchScalarGridSpec(
            num_scalar_prefetch=0,
            grid=(nm, nn, nk),
            in_specs=[
                pl.BlockSpec((tm, tk), lambda i, j, k: (i, k)),   # x row tile
                w_spec,                                            # weight tile
                pl.BlockSpec((1, tn), lambda i, j, k: (0, j)),    # bias (f32)
            ],
            out_specs=pl.BlockSpec((tm, tn), lambda i, j, k: (i, j)),
            scratch_shapes=([pltpu.VMEM((tm, tn), jnp.float32)] if nk > 1 else []),
        ),
        compiler_params=pltpu.CompilerParams(
            dimension_semantics=("parallel", "parallel", "arbitrary"),
            vmem_limit_bytes=limit,
        ),
    )(x2, w, b2)
    return out.reshape(*orig_shape[:-1], N)


# ---------------------------------------------------------------------------
# 2. Fused AttFlat pooling: glimpse projection + zero-row mask + masked softmax
#    + attention-weighted sum, in one pass over h and x.
# ---------------------------------------------------------------------------
def _attflat_pool_kernel(h_ref, x_ref, w2_ref, b2_ref, o_ref):
    f32 = jnp.float32
    hv = h_ref[...].astype(f32)                                    # (Bt, S, C)
    xv = x_ref[...].astype(f32)                                    # (Bt, S, C)
    w2 = w2_ref[...].astype(f32)                                   # (1, 1, C)
    # glimpse projection: att[b, s] = h[b, s, :] @ w2 + b2
    att = jnp.sum(hv * w2, axis=-1, keepdims=True) + b2_ref[...]   # (Bt, S, 1)
    # make_mask(): positions whose x row is exactly all-zero
    zero_row = jnp.sum(jnp.abs(xv), axis=-1, keepdims=True) == 0.0
    att = jnp.where(zero_row, -1e9, att)
    # masked softmax over the sequence axis (fully-masked sequences -> uniform,
    # same as the PyTorch original)
    m = jnp.max(att, axis=1, keepdims=True)                        # (Bt, 1, 1)
    p = jnp.exp(att - m)
    p = p * pl.reciprocal(jnp.sum(p, axis=1, keepdims=True), approx=True)
    # attention-weighted sum over the sequence
    o_ref[...] = jnp.sum(p * xv, axis=1, keepdims=True).astype(o_ref.dtype)


def attflat_pool(h, x, w2, b2):
    """h, x: (B, S, C); w2: (C, 1); b2: (1,).  Returns pooled (B, C) f32."""
    B, S, C = x.shape
    budget, limit, _ = _vmem_params()
    # Several batch rows per grid step (amortize per-step overhead), bounded by
    # the two double-buffered (Bt, S, C) input streams.
    per_row = 2 * S * C * (h.dtype.itemsize + x.dtype.itemsize)
    Bt = int(max(1, min(B, 8, budget // max(per_row, 1))))

    w2r = w2.astype(jnp.float32).reshape(1, 1, C)
    b2r = (jnp.zeros((1, 1, 1), jnp.float32) if b2 is None
           else b2.astype(jnp.float32).reshape(1, 1, 1))

    out = pl.pallas_call(
        _attflat_pool_kernel,
        out_shape=jax.ShapeDtypeStruct((B, 1, C), jnp.float32),
        grid_spec=pltpu.PrefetchScalarGridSpec(
            num_scalar_prefetch=0,
            grid=(pl.cdiv(B, Bt),),
            in_specs=[
                pl.BlockSpec((Bt, S, C), lambda i: (i, 0, 0)),   # h
                pl.BlockSpec((Bt, S, C), lambda i: (i, 0, 0)),   # x
                pl.BlockSpec((1, 1, C), lambda i: (0, 0, 0)),    # w2 (glimpse proj)
                pl.BlockSpec((1, 1, 1), lambda i: (0, 0, 0)),    # b2
            ],
            out_specs=pl.BlockSpec((Bt, 1, C), lambda i: (i, 0, 0)),
        ),
        compiler_params=pltpu.CompilerParams(
            dimension_semantics=("parallel",),
            vmem_limit_bytes=limit,
        ),
    )(h, x, w2r, b2r)
    return out.reshape(B, C)


# ---------------------------------------------------------------------------
# 3. Fused tail: merge-linear -> torch-style LayerNorm -> r1(+ReLU) -> r2
# ---------------------------------------------------------------------------
def _routing_tail_kernel(xp_ref, mw_ref, mb_ref, la_ref, lb_ref,
                         r1_ref, r2_ref, r2b_ref, o_ref, *, eps):
    f32 = jnp.float32
    xp = xp_ref[...].astype(f32)                                   # (B, C)
    # linear_merge
    y = jnp.dot(xp, mw_ref[...].astype(f32),
                preferred_element_type=f32) + mb_ref[...]
    # torch-style LayerNorm: unbiased std (ddof=1), eps added to std.
    # (Requires C > 1, same as torch.std; C == 1 is degenerate for this module.)
    n = y.shape[-1]
    mean = jnp.mean(y, axis=-1, keepdims=True)
    d = y - mean
    var = jnp.sum(d * d, axis=-1, keepdims=True) / (n - 1)
    y = la_ref[...] * d / (jnp.sqrt(var) + eps) + lb_ref[...]
    # routing MLP: Linear(C -> C//r, no bias) -> ReLU -> Linear(C//r -> out)
    h2 = jnp.maximum(jnp.dot(y, r1_ref[...].astype(f32),
                             preferred_element_type=f32), 0.0)
    logits = jnp.dot(h2, r2_ref[...].astype(f32),
                     preferred_element_type=f32) + r2b_ref[...]
    o_ref[...] = logits.astype(o_ref.dtype)


def routing_tail(pooled, p, *, eps=1e-6):
    B, C = pooled.shape
    Cr = p["r1_w"].shape[1]
    Nout = p["r2_w"].shape[1]
    _, limit, _ = _vmem_params()

    def full(shape):
        return pl.BlockSpec(shape, lambda i: (0,) * len(shape))

    return pl.pallas_call(
        functools.partial(_routing_tail_kernel, eps=eps),
        out_shape=jax.ShapeDtypeStruct((B, Nout), jnp.float32),
        grid_spec=pltpu.PrefetchScalarGridSpec(
            num_scalar_prefetch=0,
            grid=(1,),
            in_specs=[
                full((B, C)),            # pooled
                full((C, C)),            # merge_w
                full((1, C)),            # merge_b
                full((1, C)),            # ln_a
                full((1, C)),            # ln_b
                full((C, Cr)),           # r1_w (no bias)
                full((Cr, Nout)),        # r2_w
                full((1, Nout)),         # r2_b
            ],
            out_specs=full((B, Nout)),
        ),
        compiler_params=pltpu.CompilerParams(
            dimension_semantics=("arbitrary",),
            vmem_limit_bytes=limit,
        ),
    )(pooled,
      p["merge_w"], p["merge_b"].reshape(1, C),
      p["ln_a"].reshape(1, C), p["ln_b"].reshape(1, C),
      p["r1_w"], p["r2_w"], p["r2_b"].reshape(1, Nout))


# ---------------------------------------------------------------------------
# HardRoutingBlock forward (pooling='attention', the module default)
# ---------------------------------------------------------------------------
def hard_routing_forward(x, params, tau, masks=None, *, gumbel_noise=None,
                         compute_dtype=None):
    """x: (B, S, C).  `masks` is accepted for signature parity with the PyTorch
    module but (as in the original attention path) unused.

    compute_dtype=jnp.bfloat16 is the recommended production setting on
    v6e/v7x: the heavy matmul and the h intermediate run/store in bf16 while
    accumulation, softmax and LayerNorm stay f32.
    """
    del masks
    p = params
    # TODO(synk): training-mode dropout (dropout_r=0.1 in AttFlat's FC) is not
    # implemented; at inference it is the identity, matching module.eval().
    h = pallas_linear(x, p["mlp_fc_w"], p["mlp_fc_b"], use_relu=True,
                      compute_dtype=compute_dtype, out_dtype=compute_dtype)
    pooled = attflat_pool(h, x, p["mlp_lin_w"], p["mlp_lin_b"])    # (B, C)
    logits = routing_tail(pooled, p)                               # (B, out)

    # Gumbel-softmax head ((B, out_channel): tiny, XLA glue).
    # TODO(synk): 'avg'/'fc' pooling branches and in-kernel pltpu.prng_* Gumbel
    # noise are not implemented; noise comes from jax.random for determinism.
    if gumbel_noise is None:
        gumbel_noise = jax.random.gumbel(jax.random.PRNGKey(0), logits.shape,
                                         dtype=jnp.float32)
    lsm = jax.nn.log_softmax(logits, axis=-1)
    return jax.nn.softmax((lsm + gumbel_noise) / tau, axis=-1)


# ---------------------------------------------------------------------------
# Parameter init (nn.Linear / LayerNorm defaults) and pure-JAX reference
# ---------------------------------------------------------------------------
def _linear_init(key, in_size, out_size, bias=True, dtype=jnp.float32):
    kw, kb = jax.random.split(key)
    bound = 1.0 / (in_size ** 0.5)
    w = jax.random.uniform(kw, (in_size, out_size), dtype, minval=-bound, maxval=bound)
    b = (jax.random.uniform(kb, (out_size,), dtype, minval=-bound, maxval=bound)
         if bias else None)
    return w, b


def init_hard_routing_params(key, in_channel, out_channel, reduction=2, glimpses=1):
    ks = jax.random.split(key, 5)
    p = {}
    p["mlp_fc_w"], p["mlp_fc_b"] = _linear_init(ks[0], in_channel, in_channel)
    p["mlp_lin_w"], p["mlp_lin_b"] = _linear_init(ks[1], in_channel, glimpses)
    p["merge_w"], p["merge_b"] = _linear_init(ks[2], in_channel * glimpses, in_channel)
    p["ln_a"] = jnp.ones((in_channel,), jnp.float32)
    p["ln_b"] = jnp.zeros((in_channel,), jnp.float32)
    p["r1_w"], _ = _linear_init(ks[3], in_channel, in_channel // reduction, bias=False)
    p["r2_w"], p["r2_b"] = _linear_init(ks[4], in_channel // reduction, out_channel)
    return p


def ref_hard_routing_forward(x, p, tau, gumbel_noise, eps=1e-6):
    """Pure-JAX reference mirroring the PyTorch forward (inference mode)."""
    hi = jax.lax.Precision.HIGHEST
    mask = jnp.sum(jnp.abs(x), axis=-1) == 0
    h = jnp.maximum(jnp.dot(x, p["mlp_fc_w"], precision=hi) + p["mlp_fc_b"], 0.0)
    att = jnp.dot(h, p["mlp_lin_w"], precision=hi) + p["mlp_lin_b"]
    att = jnp.where(mask[..., None], -1e9, att)
    att = jax.nn.softmax(att, axis=1)
    x_atted = jnp.sum(att * x, axis=1)
    x_atted = jnp.dot(x_atted, p["merge_w"], precision=hi) + p["merge_b"]
    mean = jnp.mean(x_atted, axis=-1, keepdims=True)
    std = jnp.std(x_atted, axis=-1, ddof=1, keepdims=True)   # torch unbiased std
    x_atted = p["ln_a"] * (x_atted - mean) / (std + eps) + p["ln_b"]
    h2 = jnp.maximum(jnp.dot(x_atted, p["r1_w"], precision=hi), 0.0)
    logits = jnp.dot(h2, p["r2_w"], precision=hi) + p["r2_b"]
    lsm = jax.nn.log_softmax(logits, axis=-1)
    return jax.nn.softmax((lsm + gumbel_noise) / tau, axis=-1)


if __name__ == "__main__":
    key = jax.random.PRNGKey(0)
    k_x, k_p, k_g = jax.random.split(key, 3)

    batch, seq, in_channel, out_channel, reduction = 2, 8, 32, 4, 2
    tau = 0.7

    x = jax.random.normal(k_x, (batch, seq, in_channel), dtype=jnp.float32)
    # zero out the tail of one sequence so make_mask() actually masks something
    x = x.at[1, 6:].set(0.0)

    params = init_hard_routing_params(k_p, in_channel, out_channel, reduction)
    gumbel_noise = jax.random.gumbel(k_g, (batch, out_channel), dtype=jnp.float32)

    alpha = hard_routing_forward(x, params, tau, masks=None,
                                 gumbel_noise=gumbel_noise)
    alpha = jax.block_until_ready(alpha)

    ref = ref_hard_routing_forward(x, params, tau, gumbel_noise)
    assert alpha.shape == (batch, out_channel)
    assert jnp.allclose(jnp.sum(alpha, axis=-1), 1.0, atol=1e-4)
    assert jnp.allclose(alpha, ref, atol=3e-3, rtol=3e-3), \
        float(jnp.max(jnp.abs(alpha - ref)))

    # bf16 compute / bf16-out path of the heavy linear (recommended on v6e/v7x).
    k_bx, k_bw = jax.random.split(jax.random.PRNGKey(1))
    xb = jax.random.normal(k_bx, (512, 256), dtype=jnp.float32)
    wb = jax.random.normal(k_bw, (256, 384), dtype=jnp.float32) * 0.05
    bb = jnp.zeros((384,), jnp.float32)
    yb = jax.block_until_ready(
        pallas_linear(xb, wb, bb, use_relu=True,
                      compute_dtype=jnp.bfloat16, out_dtype=jnp.bfloat16))
    refb = jnp.maximum(
        jnp.dot(xb.astype(jnp.bfloat16), wb.astype(jnp.bfloat16),
                preferred_element_type=jnp.float32) + bb, 0.0)
    assert yb.shape == (512, 384)
    assert jnp.allclose(yb.astype(jnp.float32), refb, atol=5e-2, rtol=5e-2)

    # full forward on the bf16 compute path (looser tolerance: bf16 intermediates)
    alpha_bf16 = jax.block_until_ready(
        hard_routing_forward(x, params, tau, gumbel_noise=gumbel_noise,
                             compute_dtype=jnp.bfloat16))
    assert alpha_bf16.shape == (batch, out_channel)
    assert jnp.allclose(jnp.sum(alpha_bf16, axis=-1), 1.0, atol=1e-3)
    assert jnp.allclose(alpha_bf16, ref, atol=5e-2, rtol=5e-2)

    print("KERNEL_OK")
</pallas_src>

<mosaic_0001>
module attributes {stable_mosaic.version = 11 : i64} {
  func.func @_linear_kernel(%arg0: i32, %arg1: i32, %arg2: i32, %arg3: memref<8x32xf32, #tpu.memory_space<vmem>>, %arg4: memref<32x32xf32, #tpu.memory_space<vmem>>, %arg5: memref<1x32xf32, #tpu.memory_space<vmem>>, %arg6: memref<8x32xf32, #tpu.memory_space<vmem>>) attributes {dimension_semantics = [#tpu.dimension_semantics<parallel>, #tpu.dimension_semantics<parallel>, #tpu.dimension_semantics<arbitrary>], iteration_bounds = array<i64: 2, 1, 1>, scalar_prefetch = 0 : i64, scratch_operands = 0 : i64, tpu.core_type = #tpu.core_type<tc>, window_params = [{transform_indices = @transform_0, window_bounds = array<i64: 8, 32>}, {transform_indices = @transform_1, window_bounds = array<i64: 32, 32>}, {transform_indices = @transform_2, window_bounds = array<i64: 1, 32>}, {transform_indices = @transform_3, window_bounds = array<i64: 8, 32>}]} {
    %c0 = arith.constant 0 : index
    %c0_0 = arith.constant 0 : index
    %0 = vector.load %arg3[%c0, %c0_0] : memref<8x32xf32, #tpu.memory_space<vmem>>, vector<8x32xf32>
    %c0_1 = arith.constant 0 : index
    %c0_2 = arith.constant 0 : index
    %1 = vector.load %arg4[%c0_1, %c0_2] : memref<32x32xf32, #tpu.memory_space<vmem>>, vector<32x32xf32>
    %cst = arith.constant dense<0.000000e+00> : vector<8x32xf32>
    %2 = tpu.matmul %0, %1, %cst {dimension_numbers = #tpu.dot_dimension_numbers<[1], [0], [0], [1], [0, 0, 1, 1], [], []>} : vector<8x32xf32>, vector<32x32xf32>, vector<8x32xf32> -> vector<8x32xf32>
    %c0_3 = arith.constant 0 : index
    %c0_4 = arith.constant 0 : index
    %3 = vector.load %arg5[%c0_3, %c0_4] : memref<1x32xf32, #tpu.memory_space<vmem>>, vector<1x32xf32>
    %4 = vector.broadcast %3 : vector<1x32xf32> to vector<8x32xf32>
    %5 = arith.addf %2, %4 : vector<8x32xf32>
    %cst_5 = arith.constant 0.000000e+00 : f32
    %6 = vector.broadcast %cst_5 : f32 to vector<8x32xf32>
    %7 = arith.maximumf %5, %6 : vector<8x32xf32>
    %c0_6 = arith.constant 0 : index
    %c0_7 = arith.constant 0 : index
    %8 = vector.load %arg6[%c0_6, %c0_7] : memref<8x32xf32, #tpu.memory_space<vmem>>, vector<8x32xf32>
    tpu.vector_store %arg6[%c0_6, %c0_7], %7 {strides = array<i32>} : memref<8x32xf32, #tpu.memory_space<vmem>>, vector<8x32xf32>,
    return
  }
  func.func @transform_0(%arg0: i32, %arg1: i32, %arg2: i32) -> (i32, i32) {
    %c0_i32 = arith.constant 0 : i32
    return %arg0, %arg2 : i32, i32
  }
  func.func @transform_1(%arg0: i32, %arg1: i32, %arg2: i32) -> (i32, i32) {
    %c0_i32 = arith.constant 0 : i32
    return %arg2, %arg1 : i32, i32
  }
  func.func @transform_2(%arg0: i32, %arg1: i32, %arg2: i32) -> (i32, i32) {
    %c0_i32 = arith.constant 0 : i32
    %c0_i32_0 = arith.constant 0 : i32
    return %c0_i32, %arg1 : i32, i32
  }
  func.func @transform_3(%arg0: i32, %arg1: i32, %arg2: i32) -> (i32, i32) {
    %c0_i32 = arith.constant 0 : i32
    return %arg0, %arg1 : i32, i32
  }
}

</mosaic_0001>

<bundles_post_ra>
// kernel: tpu_custom_call.1
= control target key start
LH: loop header
LB: loop body
LE: loop exit
PB: predicated region body
PF: predicated region fallthrough
CT: control target
= control target key end

     0   :  { %8 = vsyncpa [#allocation3], 0  ;;  %s826_s0 = inlined_call_operand.hbm [shape: f32[16,32], index: 0, kind: input, shape index: {}]   ;;  %s827_s1 = inlined_call_operand.hbm [shape: f32[32,32], index: 1, kind: input, shape index: {}]   ;;  %s828_s2 = inlined_call_operand.vmem [shape: f32[1,32], index: 2, kind: input, shape index: {}]   ;;  %s829_s3 = inlined_call_operand.hbm [shape: f32[16,32], index: 3, kind: output, shape index: {}]  }
   0x1   :  { %10 = vsyncpa [#allocation3 + $0x1], 0 }
   0x2   :  { %11 = vsyncpa [#allocation6], 0 }
   0x3   :  { %12 = vsyncpa [#allocation4], 0 }
   0x4   :  { %14 = vsyncpa [#allocation4 + $0x1], 0  ;;  %s680_s12 = smov 0   ;;  %s682_s13 = smov 0  }
   0x5   :  { %s684_s14 = smov 0   ;;  %s686_s15 = smov 0  }
   0x6   :  { %s688_s16 = smov 0   ;;  %s690_s17 = smov 0  }
   0x7 LB: > { %s416_s18 = sadd.s32 4294967295, %s655_s17   ;;  %p418_p0 = scmp.ge.s32.totalorder %s655_s17, 1  ;;  %s655_s17 = sphi %s690_s17, %s20_s17   ;;  %s651_s16 = sphi %s688_s16, %s840_s16   ;;  %s647_s15 = sphi %s686_s15, %s839_s15   ;;  %s643_s14 = sphi %s684_s14, %s838_s14   ;;  %s639_s13 = sphi %s682_s13, %s837_s13   ;;  %s635_s12 = sphi %s680_s12, %s836_s12  }
   0x8   : > { %p712_p1 = scmp.eq.s32.totalorder %s416_s18, 0  ;;  %p154_p2 = scmp.lt.s32.totalorder %s655_s17, 3 }
   0x9   : > { %s169_s22 = sshll.u32 %s827_s1, 4  ;;  %s657_s24 = smov [#allocation5]   ;;  %s170_s22 = int_to_ptr.hbm [resolvable:$true] %s169_s22 }
   0xa   : > { %p720_p3 = pnand %p418_p0, %p154_p2  ;;  %s171_s25 = sshll.u32 %s657_s24, 4  ;;  %s172_s25 = int_to_ptr.vmem [resolvable:$true] %s171_s25 }
   0xb   : > { %p421_p6 = scmp.ge.s32.totalorder %s655_s17, 2  ;;  %s658_s26 = smov 128  }
   0xc   : > { %p441_p4 = pneg %p720_p3  ;;  %s659_s27 = smov 8  }
   0xd   : > { %s417_s28 = sadd.s32 4294967294, %s655_s17   ;;  %s39_s29 = sadd.s32 1, %s651_s16 }
   0xe   : > { %p442_p5 = pnand %p441_p4, %p712_p1  ;;  %s48_s30 = sadd.s32 1, %s643_s14 }
   0xf   : > { %p41_p7 = scmp.ge.s32.totalorder %s39_s29, 2  ;;  %p55_p8 = scmp.ne.s32.totalorder %s643_s14, %s639_s13 }
  0x10   : > { %444 = dma.hbm_to_vmem [thread:$0]  (!%p442_p5), %s170_s22, 512, %s172_s25, [#allocation6], %s658_s26, %s658_s26, %s659_s27  }
  0x11   : > { %p56_p9 = scmp.eq.s32.totalorder %s655_s17, 0  ;;  %p61_p10 = scmp.ne.s32.totalorder %s639_s13, %s635_s12 }
  0x12   : > { %s842_s29 = smov (%p41_p7, %s39_s29), 0  ;;  %p141_p13 = scmp.eq.s32.totalorder %s416_s18, 1 }
  0x13   : > { %p739_p11 = por %p56_p9, %p55_p8  ;;  %p745_p12 = por %p712_p1, %p61_p10 }
  0x14   : > { %s43_s6 = ssub.s32 %s651_s16, %s842_s29  ;;  %p147_p2 = scmp.eq.s32.totalorder %s417_s28, 1 }
  0x15   : > { %p46_p0 = scmp.eq.s32.totalorder %s43_s6, 0  ;;  %p751_p4 = por %p141_p13, %p55_p8 }
  0x16   : > { %p454_p5 = scmp.lt.s32.totalorder %s655_s17, 2  ;;  %p759_p7 = por %p147_p2, %p61_p10 }
  0x17   : > { %s757_s8 = scalar_select %p46_p0, %s643_s14, %s48_s30  }
  0x18   : > { %s191_s10 = sand.u32 1, %s643_s14   ;;  %s423_s20 = sshll.u32 %s651_s16, 3 }
  0x19   : > { %s422_s11 = sshll.u32 %s191_s10, 3  ;;  %s200_s18 = scalar_lea.hbm %s826_s0, %s423_s20 }
  0x1a   : > { %s195_s24 = scalar_lea.vmem [#allocation2], %s422_s11  ;;  %s202_s26 = sshll.u32 %s200_s18, 4  ;;  %s203_s26 = int_to_ptr.hbm [resolvable:$true] %s202_s26 }
  0x1b   : > { %s204_s25 = sshll.u32 %s195_s24, 4  ;;  %p446_p8 = pnand %p454_p5, %p739_p11  ;;  %s205_s25 = int_to_ptr.vmem [resolvable:$true] %s204_s25 }
  0x1c   : > { %s192_s27 = scalar_lea.sflag [#allocation3], %s191_s10  ;;  %213 = sbr.rel (%p720_p3) target bundleno = 177 (0xb1), region = 32 }
  0x1d   : > { %448 = dma.hbm_to_vmem [thread:$0]  (!%p446_p8), %s203_s26, 128, %s205_s25, %s192_s27  }
  0x1e   : > { %s773_s28 = sand.u32 (!%p720_p3), 1, %s639_s13  }
  0x1f   : > { %s425_s30 = sshll.u32 (!%p720_p3), %s773_s28, 3  ;;  %s216_s6 = scalar_lea.sflag (!%p720_p3), [#allocation3], %s773_s28 }
  0x20   : > { %s219_s11 = scalar_lea.vmem (!%p720_p3), [#allocation2], %s425_s30 }
  0x21   : > { %622 = dma.done.wait (%p745_p12), %s216_s6, 128  }
  0x22   : > { %624 = vsyncadd (%p745_p12), %s216_s6, 4294967168 }
  0x23   : > { %626 = dma.done.wait (%p712_p1), [#allocation6], 512  }
  0x24   : > { %628 = vsyncadd (%p712_p1), [#allocation6], 4294966784  ;;  %v259_v0 = vld [vmem:[#allocation5 + $0x18] sm:$0xff]  ;;  %v258_v1 = vld [vmem:[#allocation5 + $0x10] sm:$0xff]  ;;  %vm264_vm0 = vcmask 261120   ;;  %s430_s23 = sshll.u32 %s647_s15, 3 }
  0x25   : > { %280 = vmatpush.msra.mxu0 %v259_v0  ;;  %v257_v2 = vld [vmem:[#allocation5 + $0x8] sm:$0xff]  ;;  %v256_v3 = vld [vmem:[#allocation5] sm:$0xff]  ;;  %v255_v4 = vld [vmem:[%s219_s11] sm:$0xff]  ;;  %s302_s20 = scalar_lea.hbm %s829_s3, %s430_s23  ;;  %s250_s21 = scalar_lea.vmem [#allocation7], %s425_s30 }
  0x26   : > { %v508_v5 = vld [vmem:[%s828_s2] ss:$0 sm:$0xff]  ;;  %s304_s22 = sshll.u32 %s250_s21, 4  ;;  %s306_s18 = sshll.u32 %s302_s20, 4  ;;  %s305_s22 = int_to_ptr.vmem [resolvable:$true] %s304_s22  ;;  %s307_s18 = int_to_ptr.hbm [resolvable:$true] %s306_s18 }
  0x27   : > { %281 = vmatpush.msra.mxu0 %v258_v1  ;;  %s291_s24 = scalar_lea.sflag [#allocation4], %s773_s28  ;;  %s583_s15 = sshra.s32 %s307_s18, 4  ;;  %s584_s15 = int_to_ptr.hbm [resolvable:$true] %s583_s15 }
  0x28   : > { %s585_s25 = scalar_lea.hbm %s584_s15, 8  ;;  %s589_s6 = scalar_lea.hbm %s829_s3, 16 }
  0x29   : > { %282 = vmatpush.msra.mxu0 %v257_v2  ;;  %p586_p1 = scmp.ne.s32.totalorder %s584_s15, %s585_s25  ;;  %p590_p10 = scmp.lt.s32.totalorder %s584_s15, %s829_s3 }
  0x2a   : > { %p591_p11 = scmp.lt.s32.totalorder %s589_s6, %s585_s25 }
  0x2b   : > { %283 = vmatpush.msra.mxu0 %v256_v3  ;;  %p587_p3 = pnand %p586_p1, %p751_p4 }
  0x2c   : > { %428 = vmatmul.msk.f32.vlgmr.msra.gmra.mxu0 %vm264_vm0, %v255_v4  ;;  %p592_p12 = por %p591_p11, %p590_p10 }
  0x2d   : > { %p588_p9 = pneg %p587_p3 }
  0x2f   : > { %p593_p13 = pnand %p592_p12, %p588_p9 }
  0xa9   : > { %v285_v6 = vpop.f32.mrf.mxu0 }
  0xaa   : > { %v286_v7 = vadd.f32 %v508_v5, %v285_v6 }
  0xac   : > { %v288_v8 = vmax.f32 %v286_v7, 0.0 }
  0xae   : > { %289 = vst.msk [vmem:[%s250_s21] sm:$0xff] %vm264_vm0, %v288_v8 }
  0xaf   : > { %596 = shalt.err (!%p593_p13)
}
  0xb0   : > { %439 = dma.vmem_to_hbm [thread:$0]  (%p751_p4), %s305_s22, 128, %s307_s18, %s291_s24  }
  0xb1 PF: > { %s318_s28 = sand.u32 1, %s635_s12   ;;  %p450_p0 = pnand %p421_p6, %p759_p7 }
  0xb2   : > { %s319_s23 = scalar_lea.sflag [#allocation4], %s318_s28 }
  0xb3   : > { %p451_p2 = pneg %p450_p0 }
  0xb5   : > { %630 = dma.done.wait (%p451_p2), %s319_s23, 128  }
  0xb6   : > { %632 = vsyncadd (%p451_p2), %s319_s23, 4294967168  ;;  %s20_s17 = sadd.s32 1, %s655_s17   ;;  %s836_s12 = smov %s639_s13 }
  0xb7   : > { %p17_p5 = scmp.ge.s32.totalorder %s20_s17, 4   ;;  %s837_s13 = smov %s643_s14 }
  0xb8   : > { %s838_s14 = smov %s757_s8  ;;  %s839_s15 = smov %s651_s16 }
  0xb9   : > { %s840_s16 = smov %s842_s29  ;;  %19 = sbr.rel (!%p17_p5) target bundleno = 7 (0x7), region = 85 }
  0xbe   :  { %325 = vsyncpa [#allocation3], 1 }
  0xbf   :  { %327 = vsyncpa [#allocation3 + $0x1], 1 }
  0xc0   :  { %328 = vsyncpa [#allocation6], 1 }
  0xc1   :  { %329 = vsyncpa [#allocation4], 1 }
  0xc2   :  { %331 = vsyncpa [#allocation4 + $0x1], 1 }

</bundles_post_ra>
